<compile_context>
chip_gen: v7x
topology: tpu7x:2x2x1
jax: 0.10.0
libtpu: 0.0.40
codegen_flags: <defaults>
</compile_context>

<pallas_src>
import functools

import jax
import jax.numpy as jnp
from jax.experimental import pallas as pl
from jax.experimental.pallas import tpu as pltpu

LANE = 128                      # lane width
ROWS = 8                        # sublane granularity / accumulator height
R_MAX = 4096                    # rows per grid step (2 MiB f32 per stream)
VMEM_LIMIT = 48 * 1024 * 1024   # explicit scoped-VMEM budget


# ---------------------------------------------------------------------------
# Kernels
# ---------------------------------------------------------------------------
def _fold_rows(x):
    """(..., R, LANE) block -> (ROWS, LANE) float32 partial sums (VPU adds)."""
    return x.astype(jnp.float32).reshape(-1, ROWS, LANE).sum(axis=0)


def _l1_none_kernel(p_ref, t_ref, o_ref):
    o_ref[...] = jnp.abs(p_ref[...] - t_ref[...]).astype(o_ref.dtype)


def _l1_none_w_kernel(p_ref, t_ref, w_ref, o_ref):
    o_ref[...] = (jnp.abs(p_ref[...] - t_ref[...]) * w_ref[...]).astype(o_ref.dtype)


def _make_sum_kernel(*, weighted, need_wsum, mask_rows, r_blk, nb, rows_total):
    """Accumulate sum(|p-t|) (optionally *w, optionally also sum(w)).

    Grid is (parallel, arbitrary).  The row-block index is
    program_id(0)*nb + program_id(1); pass nb=0 for the per-sample layout
    where axis 0 indexes samples and axis 1 indexes row blocks directly.
    All of weighted / need_wsum / mask_rows are static Python flags, so the
    clean (non-ragged) variants emit no masking code at all.
    """

    def kernel(*refs):
        if weighted:
            p_ref, t_ref, w_ref = refs[0], refs[1], refs[2]
            out_refs = refs[3:]
        else:
            p_ref, t_ref = refs[0], refs[1]
            out_refs = refs[2:]
        lsum_ref = out_refs[0]
        wsum_ref = out_refs[1] if need_wsum else None

        @pl.when(pl.program_id(1) == 0)
        def _():
            lsum_ref[...] = jnp.zeros_like(lsum_ref)
            if need_wsum:
                wsum_ref[...] = jnp.zeros_like(wsum_ref)

        # Compute in the input dtype; cast to f32 only at the fold.
        val = jnp.abs(p_ref[...] - t_ref[...])
        if weighted:
            w = w_ref[...]
            val = val * w

        if mask_rows:
            # The last block(s) read past the logical row count (unspecified
            # data): zero those rows before accumulating.
            blk = pl.program_id(0) * nb + pl.program_id(1)
            row = jax.lax.broadcasted_iota(jnp.int32, val.shape, val.ndim - 2)
            valid = (blk * r_blk + row) < rows_total
            val = jnp.where(valid, val, 0)
            if need_wsum:
                w = jnp.where(valid, w, 0)

        lsum_ref[...] += _fold_rows(val)[None]
        if need_wsum:
            wsum_ref[...] += _fold_rows(w)[None]

    return kernel


# ---------------------------------------------------------------------------
# Wrapper helpers (layout prep / pallas_call plumbing)
# ---------------------------------------------------------------------------
def _row_block(rows):
    """Rows per grid step: multiple of ROWS, <= R_MAX, start always in-bounds."""
    return min(R_MAX, max(ROWS, (rows // ROWS) * ROWS))


def _to_rows(x, rows, pad):
    """Flatten to a lane-dense (rows, LANE) slab (free reshape unless pad>0)."""
    x = x.reshape(-1)
    if pad:
        # TODO(synk): avoid this HBM copy for non-128-multiple sizes by
        # consuming the un-reshaped array and masking the ragged element tail
        # in-kernel instead of zero-padding.
        x = jnp.pad(x, (0, pad))
    return x.reshape(rows, LANE)


def _global_sums(streams, *, weighted, need_wsum):
    """Total sums over the whole flattened input (no per-sample breakdown)."""
    numel = streams[0].size
    rows = max(ROWS, pl.cdiv(numel, LANE))
    pad = rows * LANE - numel
    slabs = [_to_rows(s, rows, pad) for s in streams]

    r_blk = _row_block(rows)
    total_blocks = pl.cdiv(rows, r_blk)
    n_par = 2 if total_blocks >= 2 else 1     # keep both v7x TCs busy
    nb = pl.cdiv(total_blocks, n_par)
    mask_rows = n_par * nb * r_blk > rows
    clamp = n_par * nb > total_blocks
    last_blk = total_blocks - 1

    if clamp:
        in_map = lambda p, j: (jnp.minimum(p * nb + j, last_blk), 0)
    else:
        in_map = lambda p, j: (p * nb + j, 0)

    n_out = 2 if need_wsum else 1
    kernel = _make_sum_kernel(weighted=weighted, need_wsum=need_wsum,
                              mask_rows=mask_rows, r_blk=r_blk, nb=nb,
                              rows_total=rows)
    outs = pl.pallas_call(
        kernel,
        out_shape=tuple(jax.ShapeDtypeStruct((n_par, ROWS, LANE), jnp.float32)
                        for _ in range(n_out)),
        grid_spec=pltpu.PrefetchScalarGridSpec(
            num_scalar_prefetch=0,
            grid=(n_par, nb),
            in_specs=[pl.BlockSpec((r_blk, LANE), in_map)] * len(slabs),
            out_specs=[pl.BlockSpec((1, ROWS, LANE),
                                    lambda p, j: (p, 0, 0))] * n_out,
        ),
        compiler_params=pltpu.CompilerParams(
            dimension_semantics=("parallel", "arbitrary"),
            vmem_limit_bytes=VMEM_LIMIT),
    )(*slabs)

    totals = [jnp.sum(o) for o in outs]
    return totals[0], (totals[1] if need_wsum else None)


def _per_sample_sums(pred, target, weight):
    """Per-sample sums of |p-t|*w and of w (weighted sample_wise 'mean')."""
    n = pred.shape[0]
    per = pred.size // n
    p_rows = max(ROWS, pl.cdiv(per, LANE))
    pad = p_rows * LANE - per

    def prep(x):
        x = x.reshape(n, per)
        if pad:
            # TODO(synk): same ragged-tail in-kernel masking opportunity as
            # in _to_rows (avoids a full-size zero-padded copy).
            x = jnp.pad(x, ((0, 0), (0, pad)))
        return x.reshape(n, p_rows, LANE)

    p3, t3, w3 = prep(pred), prep(target), prep(weight)

    r_blk = _row_block(p_rows)
    nb = pl.cdiv(p_rows, r_blk)
    mask_rows = nb * r_blk > p_rows

    kernel = _make_sum_kernel(weighted=True, need_wsum=True,
                              mask_rows=mask_rows, r_blk=r_blk, nb=0,
                              rows_total=p_rows)
    blk = pl.BlockSpec((1, r_blk, LANE), lambda i, j: (i, j, 0))
    acc = pl.BlockSpec((1, ROWS, LANE), lambda i, j: (i, 0, 0))
    lsum, wsum = pl.pallas_call(
        kernel,
        out_shape=(jax.ShapeDtypeStruct((n, ROWS, LANE), jnp.float32),
                   jax.ShapeDtypeStruct((n, ROWS, LANE), jnp.float32)),
        grid_spec=pltpu.PrefetchScalarGridSpec(
            num_scalar_prefetch=0,
            grid=(n, nb),
            in_specs=[blk, blk, blk],
            out_specs=[acc, acc],
        ),
        compiler_params=pltpu.CompilerParams(
            dimension_semantics=("parallel", "arbitrary"),
            vmem_limit_bytes=VMEM_LIMIT),
    )(p3, t3, w3)
    return jnp.sum(lsum, axis=(1, 2)), jnp.sum(wsum, axis=(1, 2))


def _elementwise_none(pred, target, weight, has_weight):
    """reduction='none': elementwise |p-t| (optionally * w)."""
    numel = pred.size
    rows = max(ROWS, pl.cdiv(numel, LANE))
    pad = rows * LANE - numel

    streams = [pred, target] + ([weight] if has_weight else [])
    slabs = [_to_rows(s, rows, pad) for s in streams]
    out_dtype = (jnp.promote_types(pred.dtype, weight.dtype)
                 if has_weight else pred.dtype)

    r_blk = _row_block(rows)
    nbt = pl.cdiv(rows, r_blk)
    blk = pl.BlockSpec((r_blk, LANE), lambda j: (j, 0))
    kernel = _l1_none_w_kernel if has_weight else _l1_none_kernel

    out = pl.pallas_call(
        kernel,
        out_shape=jax.ShapeDtypeStruct((rows, LANE), out_dtype),
        grid_spec=pltpu.PrefetchScalarGridSpec(
            num_scalar_prefetch=0,
            grid=(nbt,),
            in_specs=[blk] * len(slabs),
            out_specs=blk,
        ),
        compiler_params=pltpu.CompilerParams(
            dimension_semantics=("parallel",),
            vmem_limit_bytes=VMEM_LIMIT),
    )(*slabs)

    if pad:
        # TODO(synk): write the output directly in the unpadded layout
        # (masked final store) so this output-sized slice copy disappears.
        out = out.reshape(-1)[:numel]
    return out.reshape(pred.shape)


# ---------------------------------------------------------------------------
# Public entry point
# ---------------------------------------------------------------------------
@functools.partial(
    jax.jit,
    static_argnames=("loss_weight", "reduction", "sample_wise", "has_weight"))
def _l1_loss_impl(pred, target, weight, *, loss_weight, reduction, sample_wise,
                  has_weight):
    if has_weight and weight.shape != pred.shape:
        # TODO(synk): broadcast small (e.g. per-channel) weights in-kernel
        # instead of materializing a full-size copy in HBM.
        weight = jnp.broadcast_to(weight, pred.shape)

    if reduction == 'none':
        return loss_weight * _elementwise_none(pred, target, weight, has_weight)

    eps = 1e-12
    numel = pred.size
    n = pred.shape[0]

    if reduction == 'mean' and has_weight and sample_wise:
        lsum, wsum = _per_sample_sums(pred, target, weight)
        total = jnp.sum(lsum / (wsum + eps)) / n
    else:
        need_wsum = has_weight and reduction == 'mean'
        streams = [pred, target] + ([weight] if has_weight else [])
        lsum, wsum = _global_sums(streams, weighted=has_weight,
                                  need_wsum=need_wsum)
        if reduction == 'sum':
            total = lsum
        elif has_weight:                    # weighted, non-sample-wise mean
            total = lsum / (wsum + eps)
        else:                               # unweighted mean
            total = lsum / numel
    return loss_weight * total


class L1Loss:
    """JAX/Pallas re-implementation of mmagic's L1Loss (forward only)."""

    def __init__(self, loss_weight: float = 1.0, reduction: str = 'mean',
                 sample_wise: bool = False):
        if reduction not in ('none', 'mean', 'sum'):
            raise ValueError(f'Unsupported reduction mode: {reduction}.')
        self.loss_weight = float(loss_weight)
        self.reduction = reduction
        self.sample_wise = sample_wise

    def __call__(self, pred, target, weight=None):
        has_weight = weight is not None
        if not has_weight:
            weight = jnp.zeros((), pred.dtype)  # dummy; unused on this path
        return _l1_loss_impl(
            pred, target, weight,
            loss_weight=self.loss_weight,
            reduction=self.reduction,
            sample_wise=self.sample_wise,
            has_weight=has_weight,
        )


# ---------------------------------------------------------------------------
# Demo / correctness check
# ---------------------------------------------------------------------------
if __name__ == "__main__":
    key = jax.random.PRNGKey(0)
    k1, k2, k3 = jax.random.split(key, 3)
    shape = (2, 4, 16, 16)  # (N, C, H, W)
    pred = jax.random.normal(k1, shape, dtype=jnp.float32)
    target = jax.random.normal(k2, shape, dtype=jnp.float32)
    weight = jax.random.uniform(k3, shape, dtype=jnp.float32)
    eps = 1e-12

    # default config: loss_weight=1.0, reduction='mean', sample_wise=False
    loss_mod = L1Loss()
    out = jax.block_until_ready(loss_mod(pred, target))
    ref = jnp.mean(jnp.abs(pred - target))
    assert jnp.allclose(out, ref, rtol=1e-6, atol=1e-6), (out, ref)

    # weighted mean (sample_wise=False)
    out_w = jax.block_until_ready(loss_mod(pred, target, weight))
    ref_w = jnp.sum(jnp.abs(pred - target) * weight) / (jnp.sum(weight) + eps)
    assert jnp.allclose(out_w, ref_w, rtol=1e-5, atol=1e-6), (out_w, ref_w)

    # weighted mean (sample_wise=True)
    loss_sw = L1Loss(reduction='mean', sample_wise=True)
    out_sw = jax.block_until_ready(loss_sw(pred, target, weight))
    l_s = jnp.sum(jnp.abs(pred - target) * weight, axis=(1, 2, 3))
    w_s = jnp.sum(weight, axis=(1, 2, 3))
    ref_sw = jnp.sum(l_s / (w_s + eps)) / shape[0]
    assert jnp.allclose(out_sw, ref_sw, rtol=1e-5, atol=1e-6), (out_sw, ref_sw)

    # sum reduction
    out_s = jax.block_until_ready(L1Loss(reduction='sum')(pred, target))
    assert jnp.allclose(out_s, jnp.sum(jnp.abs(pred - target)),
                        rtol=1e-5, atol=1e-5)

    # 'none' reduction (with and without weight)
    out_n = jax.block_until_ready(L1Loss(reduction='none')(pred, target))
    assert out_n.shape == shape
    assert jnp.allclose(out_n, jnp.abs(pred - target), rtol=1e-6, atol=1e-6)
    out_nw = jax.block_until_ready(L1Loss(reduction='none')(pred, target, weight))
    assert jnp.allclose(out_nw, jnp.abs(pred - target) * weight,
                        rtol=1e-6, atol=1e-6)

    # Shape whose row count (12) is not a multiple of the row block (8):
    # exercises the ragged-row in-kernel mask and the 2-way parallel split.
    shape2 = (3, 8, 8, 8)
    p2 = jax.random.normal(k1, shape2, dtype=jnp.float32)
    t2 = jax.random.normal(k2, shape2, dtype=jnp.float32)
    w2 = jax.random.uniform(k3, shape2, dtype=jnp.float32)
    out2 = jax.block_until_ready(L1Loss()(p2, t2))
    assert jnp.allclose(out2, jnp.mean(jnp.abs(p2 - t2)), rtol=1e-6, atol=1e-6)
    out2w = jax.block_until_ready(L1Loss()(p2, t2, w2))
    ref2w = jnp.sum(jnp.abs(p2 - t2) * w2) / (jnp.sum(w2) + eps)
    assert jnp.allclose(out2w, ref2w, rtol=1e-5, atol=1e-6), (out2w, ref2w)

    print("KERNEL_OK")
</pallas_src>

<mosaic_0001>
module attributes {stable_mosaic.version = 11 : i64} {
  func.func @kernel(%arg0: i32, %arg1: i32, %arg2: memref<16x128xf32, #tpu.memory_space<vmem>>, %arg3: memref<16x128xf32, #tpu.memory_space<vmem>>, %arg4: memref<1x8x128xf32, #tpu.memory_space<vmem>>) attributes {dimension_semantics = [#tpu.dimension_semantics<parallel>, #tpu.dimension_semantics<arbitrary>], iteration_bounds = array<i64: 1, 1>, scalar_prefetch = 0 : i64, scratch_operands = 0 : i64, tpu.core_type = #tpu.core_type<tc>, window_params = [{transform_indices = @transform_0, window_bounds = array<i64: 16, 128>}, {transform_indices = @transform_1, window_bounds = array<i64: 16, 128>}, {transform_indices = @transform_2, window_bounds = array<i64: 1, 8, 128>}]} {
    %c0_i32 = arith.constant 0 : i32
    %0 = arith.cmpi eq, %arg1, %c0_i32 : i32
    %1 = arith.extui %0 : i1 to i32
    %c0_i32_0 = arith.constant 0 : i32
    %2 = arith.cmpi ne, %1, %c0_i32_0 : i32
    scf.if %2 {
      %cst_10 = arith.constant 0.000000e+00 : f32
      %13 = vector.broadcast %cst_10 : f32 to vector<1x8x128xf32>
      %c0_11 = arith.constant 0 : index
      %c0_12 = arith.constant 0 : index
      %c0_13 = arith.constant 0 : index
      %14 = vector.load %arg4[%c0_11, %c0_12, %c0_13] : memref<1x8x128xf32, #tpu.memory_space<vmem>>, vector<1x8x128xf32>
      tpu.vector_store %arg4[%c0_11, %c0_12, %c0_13], %13 {strides = array<i32>} : memref<1x8x128xf32, #tpu.memory_space<vmem>>, vector<1x8x128xf32>,
    } else {
    }
    %c0 = arith.constant 0 : index
    %c0_1 = arith.constant 0 : index
    %3 = vector.load %arg2[%c0, %c0_1] : memref<16x128xf32, #tpu.memory_space<vmem>>, vector<16x128xf32>
    %c0_2 = arith.constant 0 : index
    %c0_3 = arith.constant 0 : index
    %4 = vector.load %arg3[%c0_2, %c0_3] : memref<16x128xf32, #tpu.memory_space<vmem>>, vector<16x128xf32>
    %5 = arith.subf %3, %4 : vector<16x128xf32>
    %6 = math.absf %5 : vector<16x128xf32>
    %c0_4 = arith.constant 0 : index
    %c0_5 = arith.constant 0 : index
    %c0_6 = arith.constant 0 : index
    %7 = vector.load %arg4[%c0_4, %c0_5, %c0_6] : memref<1x8x128xf32, #tpu.memory_space<vmem>>, vector<1x8x128xf32>
    %8 = vector.shape_cast %6 : vector<16x128xf32> to vector<2x8x128xf32>
    %cst = arith.constant dense<0.000000e+00> : vector<8x128xf32>
    %9 = vector.multi_reduction <add>, %8, %cst [0] : vector<2x8x128xf32> to vector<8x128xf32>
    %10 = vector.shape_cast %9 : vector<8x128xf32> to vector<1x8x128xf32>
    %11 = arith.addf %7, %10 : vector<1x8x128xf32>
    %c0_7 = arith.constant 0 : index
    %c0_8 = arith.constant 0 : index
    %c0_9 = arith.constant 0 : index
    %12 = vector.load %arg4[%c0_7, %c0_8, %c0_9] : memref<1x8x128xf32, #tpu.memory_space<vmem>>, vector<1x8x128xf32>
    tpu.vector_store %arg4[%c0_7, %c0_8, %c0_9], %11 {strides = array<i32>} : memref<1x8x128xf32, #tpu.memory_space<vmem>>, vector<1x8x128xf32>,
    return
  }
  func.func @transform_0(%arg0: i32, %arg1: i32) -> (i32, i32) {
    %c1_i32 = arith.constant 1 : i32
    %0 = arith.muli %arg0, %c1_i32 : i32
    %1 = arith.addi %0, %arg1 : i32
    %c0_i32 = arith.constant 0 : i32
    %c0_i32_0 = arith.constant 0 : i32
    return %1, %c0_i32 : i32, i32
  }
  func.func @transform_1(%arg0: i32, %arg1: i32) -> (i32, i32) {
    %c1_i32 = arith.constant 1 : i32
    %0 = arith.muli %arg0, %c1_i32 : i32
    %1 = arith.addi %0, %arg1 : i32
    %c0_i32 = arith.constant 0 : i32
    %c0_i32_0 = arith.constant 0 : i32
    return %1, %c0_i32 : i32, i32
  }
  func.func @transform_2(%arg0: i32, %arg1: i32) -> (i32, i32, i32) {
    %c0_i32 = arith.constant 0 : i32
    %c0_i32_0 = arith.constant 0 : i32
    %c0_i32_1 = arith.constant 0 : i32
    return %arg0, %c0_i32, %c0_i32_0 : i32, i32, i32
  }
}

</mosaic_0001>

<bundles_post_ra>
// kernel: _l1_loss_impl.1
= control target key start
LH: loop header
LB: loop body
LE: loop exit
PB: predicated region body
PF: predicated region fallthrough
CT: control target
= control target key end

     0   :  { %s119_s0 = inlined_call_operand.vmem [shape: f32[16,128], index: 0, kind: input, shape index: {}]   ;;  %s120_s1 = inlined_call_operand.vmem [shape: f32[16,128], index: 1, kind: input, shape index: {}]   ;;  %s121_s2 = inlined_call_operand.vmem [shape: f32[1,8,128], index: 2, kind: output, shape index: {}]  }
   0x1   :  { %v60_v0 = vld [vmem:[%s119_s0] sm:$0xff]  ;;  %v61_v1 = vld [vmem:[%s119_s0 + $0x8] sm:$0xff] }
   0x2   :  { %v62_v2 = vld [vmem:[%s120_s1] sm:$0xff]  ;;  %v63_v3 = vld [vmem:[%s120_s1 + $0x8] sm:$0xff] }
   0x3   :  { %v64_v4 = vsub.f32 %v60_v0, %v62_v2  ;;  %v65_v5 = vsub.f32 %v61_v1, %v63_v3 }
   0x5   :  { %v66_v6 = vand.u32 2147483647, %v64_v4  ;;  %v67_v7 = vand.u32 2147483647, %v65_v5 }
   0x7   :  { %v69_v8 = vadd.f32 %v67_v7, %v66_v6 }
   0x9   :  { %71 = vst [vmem:[%s121_s2] sm:$0xff] %v69_v8 }

</bundles_post_ra>
